<compile_context>
chip_gen: v6e
topology: v6e:2x2x1
jax: 0.10.0
libtpu: 0.0.40
codegen_flags: <defaults>
</compile_context>

<pallas_src>
import functools

import numpy as np

import jax
import jax.numpy as jnp
from jax.experimental import pallas as pl
from jax.experimental.pallas import tpu as pltpu


def _round_up(x, m):
    return ((x + m - 1) // m) * m


def _pick_block(total, quantum, max_size):
    """Largest multiple of `quantum` that divides `total` and is <= max_size.

    Returns None if no such divisor exists (caller falls back to padding)."""
    best = None
    d = quantum
    limit = min(total, max_size)
    while d <= limit:
        if total % d == 0:
            best = d
        d += quantum
    return best


# ----------------------------------------------------------------------------
# Kernel 1: conv1_1 + ReLU as an im2col matmul (MXU hot path), bf16 output
# ----------------------------------------------------------------------------
def _conv_relu_kernel(p_ref, w_ref, b_ref, o_ref):
    # p_ref: (bm, fold*K_pad) bf16   w_ref: (fold*K_pad, fold*Cout) bf16
    # b_ref: (1, fold*Cout) f32      o_ref: (bm, fold*Cout) bf16
    acc = jnp.dot(p_ref[...], w_ref[...], preferred_element_type=jnp.float32)
    acc = acc + b_ref[...]
    o_ref[...] = jnp.maximum(acc, 0.0).astype(o_ref.dtype)


def conv3x3_relu_nhwc(x_nhwc, w_oihw, bias, *, fold=4, block_rows=2048):
    """3x3 conv (padding=1, stride=1) + ReLU on NHWC input via an im2col matmul.

    `fold` consecutive spatial positions are packed into one lane-dense output
    row (block-diagonal weight trick): out width = fold*Cout >= 128, so stores
    are unmasked; the un-fold back to (N, H, W*Cout) is a free reshape.
    Returns the conv output as a lane-dense (N, H, W*Cout) bf16 array.
    """
    N, H, W, Cin = x_nhwc.shape
    Cout = w_oihw.shape[0]

    # ---- im2col (XLA glue) ---------------------------------------------------
    # TODO(synk): stream raw input row tiles (+1-row halo) with manual
    # make_async_copy double-buffering and build patches in VMEM to remove this
    # HBM expansion of the (3-channel) input entirely.
    xp = jnp.pad(x_nhwc, ((0, 0), (1, 1), (1, 1), (0, 0)))
    cols = [xp[:, dh:dh + H, dw:dw + W, :] for dh in range(3) for dw in range(3)]
    patches = jnp.stack(cols, axis=3).reshape(N * H * W, 9 * Cin)

    # weights (Cout, Cin, kh, kw) -> (kh, kw, Cin, Cout) -> (9*Cin, Cout)
    w_mat = jnp.transpose(w_oihw, (2, 3, 1, 0)).reshape(9 * Cin, Cout)

    K = 9 * Cin
    K_pad = _round_up(K, 8)
    if K_pad != K:
        patches = jnp.pad(patches, ((0, 0), (0, K_pad - K)))
        w_mat = jnp.pad(w_mat, ((0, K_pad - K), (0, 0)))

    # ---- fold `fold` rows together -> lane-dense layout ------------------------
    P = N * H * W
    bm = None
    if P % fold == 0:
        Pf = P // fold
        bm = _pick_block(Pf, 16, block_rows) or _pick_block(Pf, 8, block_rows)
    if bm is None:  # fallback: pad rows (costs one slice-copy on the way out)
        Pf = pl.cdiv(P, fold)
        bm = _round_up(min(block_rows, Pf), 16)
    grid_m = pl.cdiv(Pf, bm)
    Pf_pad = grid_m * bm
    Pe = Pf_pad * fold
    if Pe != P:
        patches = jnp.pad(patches, ((0, Pe - P), (0, 0)))

    Kf, Cf = fold * K_pad, fold * Cout
    # row-major reshape = concat of `fold` consecutive patch rows (free in XLA)
    patches_f = patches.reshape(Pf_pad, Kf).astype(jnp.bfloat16)
    # block-diagonal weights: out row i = [row fold*i @ W, ..., row fold*i+fold-1 @ W]
    w_f = jnp.kron(jnp.eye(fold, dtype=w_mat.dtype), w_mat).astype(jnp.bfloat16)
    b_f = jnp.tile(bias, fold).reshape(1, Cf).astype(jnp.float32)

    out_f = pl.pallas_call(
        _conv_relu_kernel,
        out_shape=jax.ShapeDtypeStruct((Pf_pad, Cf), jnp.bfloat16),
        grid=(grid_m,),
        in_specs=[
            pl.BlockSpec((bm, Kf), lambda i: (i, 0)),     # row tile (pipelined)
            pl.BlockSpec((Kf, Cf), lambda i: (0, 0)),     # weights, resident
            pl.BlockSpec((1, Cf), lambda i: (0, 0)),      # bias, resident
        ],
        out_specs=pl.BlockSpec((bm, Cf), lambda i: (i, 0)),
        compiler_params=pltpu.CompilerParams(
            dimension_semantics=("parallel",)),
    )(patches_f, w_f, b_f)

    out = out_f.reshape(Pe, Cout)
    if Pe != P:
        out = out[:P]
    # free (when Pe == P) row-major reinterpretation -> lane-dense (N, H, W*Cout)
    return out.reshape(N, H, W * Cout)


# ----------------------------------------------------------------------------
# Fused nearest-upsample + reflection-pad + AvgFeatAGG2d
#   out[n, oy, ox, c] = sum_h sum_w R[h, oy] * Cm[w, ox] * conv[n, h, w, c]
# where R / Cm are static per-axis counting matrices (entries = counts / k).
# ----------------------------------------------------------------------------
def _nearest_reflect_reduce_matrix(in_size, map_size, pad, k, stride, dilation):
    """(in_size, out_size) matrix M with M[src, o] = (#window hits)/k, composing
    nearest upsample to `map_size`, ReflectionPad(pad), and the unfold window
    (kernel k, stride, dilation) mean along one axis."""
    scale = in_size / map_size                     # PyTorch 'nearest' index math
    idx = np.empty(map_size + 2 * pad, dtype=np.int64)
    for p in range(map_size + 2 * pad):
        u = p - pad
        if u < 0:                                  # ReflectionPad2d semantics
            u = -u
        if u >= map_size:
            u = 2 * (map_size - 1) - u
        src = int(np.floor(u * scale))
        idx[p] = min(max(src, 0), in_size - 1)
    out_size = (map_size + 2 * pad - (dilation * (k - 1) + 1)) // stride + 1
    # TODO(synk): PyTorch computes the nearest index with float32 scale math;
    # for non-integer ratios this integer/float floor can differ by one pixel.
    M = np.zeros((in_size, out_size), dtype=np.float32)
    for o in range(out_size):
        for i in range(k):
            M[idx[o * stride + i * dilation], o] += 1.0 / k
    return M


def _row_reduce_kernel(rt_ref, x_ref, o_ref):
    # rt_ref: (out_h, H) bf16   x_ref: (H, twc) bf16   o_ref: (out_h, twc) bf16
    o_ref[...] = jnp.dot(rt_ref[...], x_ref[...],
                         preferred_element_type=jnp.float32).astype(o_ref.dtype)


def row_reduce(x_nh_wc, r_mat, *, max_wc=4096):
    """rowred[n, oy, :] = R^T @ conv[n]  on the lane-dense (N, H, W*C) view."""
    N, H, WC = x_nh_wc.shape
    out_h = r_mat.shape[1]
    twc = _pick_block(WC, 128, max_wc) or WC
    rt = jnp.asarray(r_mat.T, dtype=jnp.bfloat16)
    return pl.pallas_call(
        _row_reduce_kernel,
        out_shape=jax.ShapeDtypeStruct((N, out_h, WC), jnp.bfloat16),
        grid=(N, WC // twc),
        in_specs=[
            pl.BlockSpec((out_h, H), lambda n, j: (0, 0)),       # R^T, resident
            pl.BlockSpec((None, H, twc), lambda n, j: (n, 0, j)),
        ],
        out_specs=pl.BlockSpec((None, out_h, twc), lambda n, j: (n, 0, j)),
        compiler_params=pltpu.CompilerParams(
            dimension_semantics=("parallel", "parallel")),
    )(rt, x_nh_wc)


def _col_reduce_kernel(ct_ref, x_ref, o_ref, *, toh):
    # ct_ref: (out_w, W) bf16   x_ref: (toh, W, C) bf16   o_ref: (toh, out_w, C) f32
    ct = ct_ref[...]
    for oy in range(toh):                      # static unroll, toh small
        o_ref[oy] = jnp.dot(ct, x_ref[oy], preferred_element_type=jnp.float32)


def col_reduce(rowred, c_mat, W, C, *, max_oh=8):
    """out[n, oy, :, :] = Cm^T @ rowred[n, oy]  -> (N, out_h, out_w, C) f32."""
    N, out_h, WC = rowred.shape
    out_w = c_mat.shape[1]
    x = rowred.reshape(N, out_h, W, C)         # free row-major reinterpretation
    toh = _pick_block(out_h, 1, max_oh) or out_h
    ct = jnp.asarray(c_mat.T, dtype=jnp.bfloat16)
    kern = functools.partial(_col_reduce_kernel, toh=toh)
    return pl.pallas_call(
        kern,
        out_shape=jax.ShapeDtypeStruct((N, out_h, out_w, C), jnp.float32),
        grid=(N, out_h // toh),
        in_specs=[
            pl.BlockSpec((out_w, W), lambda n, t: (0, 0)),       # Cm^T, resident
            pl.BlockSpec((None, toh, W, C), lambda n, t: (n, t, 0, 0)),
        ],
        out_specs=pl.BlockSpec((None, toh, out_w, C), lambda n, t: (n, t, 0, 0)),
        compiler_params=pltpu.CompilerParams(
            dimension_semantics=("parallel", "parallel")),
    )(ct, x)


# ----------------------------------------------------------------------------
# Extractor forward
# ----------------------------------------------------------------------------
class ExtractorPallas:
    """Forward of DFR `Extractor` (VGG19 backbone, cnn_layers=('relu1_1',))."""

    def __init__(self, conv_w, conv_b, kernel_size=(4, 4), stride=(4, 4),
                 dilation=1, featmap_size=(32, 32),
                 conv_fold=4, conv_block_rows=2048,
                 agg_wc_tile=4096, agg_oh_tile=8):
        # TODO(synk): only the relu1_1 branch of VGG19 is materialized here
        # (the only layer requested by cnn_layers=('relu1_1',)); deeper layers
        # would repeat the same conv-as-matmul kernel pattern.
        self.conv_w = conv_w            # (64, 3, 3, 3)  OIHW
        self.conv_b = conv_b            # (64,)
        self.patch_size = kernel_size
        self.stride = stride
        self.dilation = dilation
        self.map_size = featmap_size
        self.conv_fold = conv_fold
        self.conv_block_rows = conv_block_rows
        self.agg_wc_tile = agg_wc_tile
        self.agg_oh_tile = agg_oh_tile
        ph = (kernel_size[0] - stride[0]) // 2
        pw = (kernel_size[1] - stride[1]) // 2
        self.padding = (ph, pw)
        self.out_h = int((featmap_size[0] + 2 * ph -
                          (dilation * (kernel_size[0] - 1) + 1)) / stride[0] + 1)
        self.out_w = int((featmap_size[1] + 2 * pw -
                          (dilation * (kernel_size[1] - 1) + 1)) / stride[1] + 1)
        self.out_size = (self.out_h, self.out_w)

    def __call__(self, x_nchw):
        N, _, H, W = x_nchw.shape
        C = self.conv_w.shape[0]
        # backbone: relu1_1 = ReLU(conv1_1(x)) -> lane-dense (N, H, W*C) bf16
        x_nhwc = jnp.transpose(x_nchw, (0, 2, 3, 1))
        feat = conv3x3_relu_nhwc(x_nhwc, self.conv_w, self.conv_b,
                                 fold=self.conv_fold,
                                 block_rows=self.conv_block_rows)
        # is_agg=True branch, fused: upsample('nearest') + ReflectionPad +
        # AvgFeatAGG2d == R^T @ feat @ Cm with static counting matrices.
        r_mat = _nearest_reflect_reduce_matrix(
            H, self.map_size[0], self.padding[0],
            self.patch_size[0], self.stride[0], self.dilation)
        c_mat = _nearest_reflect_reduce_matrix(
            W, self.map_size[1], self.padding[1],
            self.patch_size[1], self.stride[1], self.dilation)
        assert r_mat.shape[1] == self.out_h and c_mat.shape[1] == self.out_w
        rowred = row_reduce(feat, r_mat, max_wc=self.agg_wc_tile)
        out_nhwc = col_reduce(rowred, c_mat, W, C, max_oh=self.agg_oh_tile)
        # single feature layer -> torch.cat is identity; back to NCHW
        return jnp.transpose(out_nhwc, (0, 3, 1, 2))


# ----------------------------------------------------------------------------
# Pure-JAX reference (for a loose numerical self-check)
# ----------------------------------------------------------------------------
def _reference_forward(x_nchw, w, b, kernel_size, stride, dilation,
                       featmap_size, padding, out_size):
    y = jax.lax.conv_general_dilated(
        x_nchw, w, window_strides=(1, 1), padding=((1, 1), (1, 1)),
        dimension_numbers=("NCHW", "OIHW", "NCHW"),
        precision=jax.lax.Precision.HIGHEST)
    y = jnp.maximum(y + b.reshape(1, -1, 1, 1), 0.0)
    N, C, H, W = y.shape
    hi = (jnp.arange(featmap_size[0]) * H) // featmap_size[0]
    wi = (jnp.arange(featmap_size[1]) * W) // featmap_size[1]
    y = y[:, :, hi][:, :, :, wi]
    ph, pw = padding
    if ph or pw:
        y = jnp.pad(y, ((0, 0), (0, 0), (ph, ph), (pw, pw)), mode="reflect")
    kh, kw = kernel_size
    sh, sw = stride
    oh, ow = out_size
    acc = jnp.zeros((N, C, oh, ow), jnp.float32)
    for i in range(kh):
        for j in range(kw):
            acc = acc + y[:, :,
                          i * dilation:i * dilation + (oh - 1) * sh + 1:sh,
                          j * dilation:j * dilation + (ow - 1) * sw + 1:sw]
    return acc / float(kh * kw)


if __name__ == "__main__":
    key = jax.random.PRNGKey(0)
    k_x, k_w, k_b = jax.random.split(key, 3)

    # small shapes consistent with the module: NCHW image input (3 channels)
    N, C_in, H, W = 2, 3, 16, 16
    C_out = 64                                   # VGG19 conv1_1 output channels
    x = jax.random.normal(k_x, (N, C_in, H, W), dtype=jnp.float32)
    conv_w = 0.1 * jax.random.normal(k_w, (C_out, C_in, 3, 3), dtype=jnp.float32)
    conv_b = 0.01 * jax.random.normal(k_b, (C_out,), dtype=jnp.float32)

    # small tiles so every grid has >=2 steps at these toy shapes; the
    # defaults (2048 / 4096 / 8) are used at real DFR resolutions.
    extractor = ExtractorPallas(conv_w, conv_b,
                                kernel_size=(4, 4), stride=(4, 4),
                                dilation=1, featmap_size=(32, 32),
                                conv_fold=4, conv_block_rows=64,
                                agg_wc_tile=512, agg_oh_tile=4)

    fwd = jax.jit(lambda inp: extractor(inp))
    out = jax.block_until_ready(fwd(x))
    assert out.shape == (N, C_out, extractor.out_h, extractor.out_w), out.shape

    ref = jax.block_until_ready(_reference_forward(
        x, conv_w, conv_b, (4, 4), (4, 4), 1, (32, 32),
        extractor.padding, extractor.out_size))
    err = float(jnp.max(jnp.abs(out - ref)))
    # loose tolerance: conv / reduction matmuls run on the MXU in bf16
    # (f32 accumulation), and the conv output is stored in bf16.
    assert err < 5e-2, f"max abs err vs reference too large: {err}"

    print("KERNEL_OK")
</pallas_src>

<mosaic_0001>
module attributes {stable_mosaic.version = 11 : i64} {
  func.func @_conv_relu_kernel(%arg0: i32, %arg1: memref<64x128xbf16, #tpu.memory_space<vmem>>, %arg2: memref<128x256xbf16, #tpu.memory_space<vmem>>, %arg3: memref<1x256xf32, #tpu.memory_space<vmem>>, %arg4: memref<64x256xbf16, #tpu.memory_space<vmem>>) attributes {dimension_semantics = [#tpu.dimension_semantics<parallel>], iteration_bounds = array<i64: 2>, scalar_prefetch = 0 : i64, scratch_operands = 0 : i64, tpu.core_type = #tpu.core_type<tc>, window_params = [{transform_indices = @transform_0, window_bounds = array<i64: 64, 128>}, {pipeline_mode = #tpu.pipeline_mode<synchronous>, transform_indices = @transform_1, window_bounds = array<i64: 128, 256>}, {pipeline_mode = #tpu.pipeline_mode<synchronous>, transform_indices = @transform_2, window_bounds = array<i64: 1, 256>}, {transform_indices = @transform_3, window_bounds = array<i64: 64, 256>}]} {
    %c0 = arith.constant 0 : index
    %c0_0 = arith.constant 0 : index
    %0 = vector.load %arg1[%c0, %c0_0] : memref<64x128xbf16, #tpu.memory_space<vmem>>, vector<64x128xbf16>
    %c0_1 = arith.constant 0 : index
    %c0_2 = arith.constant 0 : index
    %1 = vector.load %arg2[%c0_1, %c0_2] : memref<128x256xbf16, #tpu.memory_space<vmem>>, vector<128x256xbf16>
    %cst = arith.constant dense<0.000000e+00> : vector<64x256xf32>
    %2 = tpu.matmul %0, %1, %cst {dimension_numbers = #tpu.dot_dimension_numbers<[1], [0], [0], [1], [0, 0, 1, 1], [], []>} : vector<64x128xbf16>, vector<128x256xbf16>, vector<64x256xf32> -> vector<64x256xf32>
    %c0_3 = arith.constant 0 : index
    %c0_4 = arith.constant 0 : index
    %3 = vector.load %arg3[%c0_3, %c0_4] : memref<1x256xf32, #tpu.memory_space<vmem>>, vector<1x256xf32>
    %4 = vector.broadcast %3 : vector<1x256xf32> to vector<64x256xf32>
    %5 = arith.addf %2, %4 : vector<64x256xf32>
    %cst_5 = arith.constant 0.000000e+00 : f32
    %6 = vector.broadcast %cst_5 : f32 to vector<64x256xf32>
    %7 = arith.maximumf %5, %6 : vector<64x256xf32>
    %8 = arith.truncf %7 : vector<64x256xf32> to vector<64x256xbf16>
    %c0_6 = arith.constant 0 : index
    %c0_7 = arith.constant 0 : index
    %9 = vector.load %arg4[%c0_6, %c0_7] : memref<64x256xbf16, #tpu.memory_space<vmem>>, vector<64x256xbf16>
    tpu.vector_store %arg4[%c0_6, %c0_7], %8 {strides = array<i32>} : memref<64x256xbf16, #tpu.memory_space<vmem>>, vector<64x256xbf16>,
    return
  }
  func.func @transform_0(%arg0: i32) -> (i32, i32) {
    %c0_i32 = arith.constant 0 : i32
    %c0_i32_0 = arith.constant 0 : i32
    return %arg0, %c0_i32 : i32, i32
  }
  func.func @transform_1(%arg0: i32) -> (i32, i32) {
    %c0_i32 = arith.constant 0 : i32
    %c0_i32_0 = arith.constant 0 : i32
    %c0_i32_1 = arith.constant 0 : i32
    return %c0_i32, %c0_i32_0 : i32, i32
  }
  func.func @transform_2(%arg0: i32) -> (i32, i32) {
    %c0_i32 = arith.constant 0 : i32
    %c0_i32_0 = arith.constant 0 : i32
    %c0_i32_1 = arith.constant 0 : i32
    return %c0_i32, %c0_i32_0 : i32, i32
  }
  func.func @transform_3(%arg0: i32) -> (i32, i32) {
    %c0_i32 = arith.constant 0 : i32
    %c0_i32_0 = arith.constant 0 : i32
    return %arg0, %c0_i32 : i32, i32
  }
}

module attributes {stable_mosaic.version = 11 : i64} {
  func.func @_row_reduce_kernel(%arg0: i32, %arg1: i32, %arg2: memref<8x16xbf16, #tpu.memory_space<vmem>>, %arg3: memref<1x16x512xbf16, #tpu.memory_space<vmem>>, %arg4: memref<1x8x512xbf16, #tpu.memory_space<vmem>>) attributes {dimension_semantics = [#tpu.dimension_semantics<parallel>, #tpu.dimension_semantics<parallel>], iteration_bounds = array<i64: 2, 2>, scalar_prefetch = 0 : i64, scratch_operands = 0 : i64, tpu.core_type = #tpu.core_type<tc>, window_params = [{pipeline_mode = #tpu.pipeline_mode<synchronous>, transform_indices = @transform_0, window_bounds = array<i64: 8, 16>}, {transform_indices = @transform_1, window_bounds = array<i64: 1, 16, 512>}, {transform_indices = @transform_2, window_bounds = array<i64: 1, 8, 512>}]} {
    %c0 = arith.constant 0 : index
    %c0_0 = arith.constant 0 : index
    %0 = vector.load %arg2[%c0, %c0_0] : memref<8x16xbf16, #tpu.memory_space<vmem>>, vector<8x16xbf16>
    %c0_1 = arith.constant 0 : index
    %c0_2 = arith.constant 0 : index
    %c0_3 = arith.constant 0 : index
    %1 = vector.load %arg3[%c0_1, %c0_2, %c0_3] : memref<1x16x512xbf16, #tpu.memory_space<vmem>>, vector<1x16x512xbf16>
    %2 = vector.shape_cast %1 : vector<1x16x512xbf16> to vector<16x512xbf16>
    %cst = arith.constant dense<0.000000e+00> : vector<8x512xf32>
    %3 = tpu.matmul %0, %2, %cst {dimension_numbers = #tpu.dot_dimension_numbers<[1], [0], [0], [1], [0, 0, 1, 1], [], []>} : vector<8x16xbf16>, vector<16x512xbf16>, vector<8x512xf32> -> vector<8x512xf32>
    %4 = arith.truncf %3 : vector<8x512xf32> to vector<8x512xbf16>
    %c0_4 = arith.constant 0 : index
    %c0_5 = arith.constant 0 : index
    %c0_6 = arith.constant 0 : index
    %5 = vector.load %arg4[%c0_4, %c0_5, %c0_6] : memref<1x8x512xbf16, #tpu.memory_space<vmem>>, vector<1x8x512xbf16>
    %6 = vector.shape_cast %5 : vector<1x8x512xbf16> to vector<8x512xbf16>
    %7 = vector.shape_cast %4 : vector<8x512xbf16> to vector<1x8x512xbf16>
    tpu.vector_store %arg4[%c0_4, %c0_5, %c0_6], %7 {strides = array<i32>} : memref<1x8x512xbf16, #tpu.memory_space<vmem>>, vector<1x8x512xbf16>,
    return
  }
  func.func @transform_0(%arg0: i32, %arg1: i32) -> (i32, i32) {
    %c0_i32 = arith.constant 0 : i32
    %c0_i32_0 = arith.constant 0 : i32
    %c0_i32_1 = arith.constant 0 : i32
    return %c0_i32, %c0_i32_0 : i32, i32
  }
  func.func @transform_1(%arg0: i32, %arg1: i32) -> (i32, i32, i32) {
    %c0_i32 = arith.constant 0 : i32
    %c0_i32_0 = arith.constant 0 : i32
    return %arg0, %c0_i32, %arg1 : i32, i32, i32
  }
  func.func @transform_2(%arg0: i32, %arg1: i32) -> (i32, i32, i32) {
    %c0_i32 = arith.constant 0 : i32
    %c0_i32_0 = arith.constant 0 : i32
    return %arg0, %c0_i32, %arg1 : i32, i32, i32
  }
}

module attributes {stable_mosaic.version = 11 : i64} {
  func.func @_col_reduce_kernel(%arg0: i32, %arg1: i32, %arg2: memref<8x16xbf16, #tpu.memory_space<vmem>>, %arg3: memref<1x4x16x64xbf16, #tpu.memory_space<vmem>>, %arg4: memref<1x4x8x64xf32, #tpu.memory_space<vmem>>) attributes {dimension_semantics = [#tpu.dimension_semantics<parallel>, #tpu.dimension_semantics<parallel>], iteration_bounds = array<i64: 2, 2>, scalar_prefetch = 0 : i64, scratch_operands = 0 : i64, tpu.core_type = #tpu.core_type<tc>, window_params = [{pipeline_mode = #tpu.pipeline_mode<synchronous>, transform_indices = @transform_0, window_bounds = array<i64: 8, 16>}, {transform_indices = @transform_1, window_bounds = array<i64: 1, 4, 16, 64>}, {transform_indices = @transform_2, window_bounds = array<i64: 1, 4, 8, 64>}]} {
    %c0 = arith.constant 0 : index
    %c0_0 = arith.constant 0 : index
    %0 = vector.load %arg2[%c0, %c0_0] : memref<8x16xbf16, #tpu.memory_space<vmem>>, vector<8x16xbf16>
    %c0_1 = arith.constant 0 : index
    %c0_2 = arith.constant 0 : index
    %c0_3 = arith.constant 0 : index
    %c0_4 = arith.constant 0 : index
    %1 = vector.load %arg3[%c0_1, %c0_2, %c0_3, %c0_4] : memref<1x4x16x64xbf16, #tpu.memory_space<vmem>>, vector<1x1x16x64xbf16>
    %2 = vector.shape_cast %1 : vector<1x1x16x64xbf16> to vector<16x64xbf16>
    %cst = arith.constant dense<0.000000e+00> : vector<8x64xf32>
    %3 = tpu.matmul %0, %2, %cst {dimension_numbers = #tpu.dot_dimension_numbers<[1], [0], [0], [1], [0, 0, 1, 1], [], []>} : vector<8x16xbf16>, vector<16x64xbf16>, vector<8x64xf32> -> vector<8x64xf32>
    %c0_5 = arith.constant 0 : index
    %c0_6 = arith.constant 0 : index
    %c0_7 = arith.constant 0 : index
    %c0_8 = arith.constant 0 : index
    %4 = vector.load %arg4[%c0_5, %c0_6, %c0_7, %c0_8] : memref<1x4x8x64xf32, #tpu.memory_space<vmem>>, vector<1x1x8x64xf32>
    %5 = vector.shape_cast %4 : vector<1x1x8x64xf32> to vector<8x64xf32>
    %6 = vector.shape_cast %3 : vector<8x64xf32> to vector<1x1x8x64xf32>
    tpu.vector_store %arg4[%c0_5, %c0_6, %c0_7, %c0_8], %6 {strides = array<i32>} : memref<1x4x8x64xf32, #tpu.memory_space<vmem>>, vector<1x1x8x64xf32>,
    %c0_9 = arith.constant 0 : index
    %c1 = arith.constant 1 : index
    %c0_10 = arith.constant 0 : index
    %c0_11 = arith.constant 0 : index
    %7 = vector.load %arg3[%c0_9, %c1, %c0_10, %c0_11] : memref<1x4x16x64xbf16, #tpu.memory_space<vmem>>, vector<1x1x16x64xbf16>
    %8 = vector.shape_cast %7 : vector<1x1x16x64xbf16> to vector<16x64xbf16>
    %cst_12 = arith.constant dense<0.000000e+00> : vector<8x64xf32>
    %9 = tpu.matmul %0, %8, %cst_12 {dimension_numbers = #tpu.dot_dimension_numbers<[1], [0], [0], [1], [0, 0, 1, 1], [], []>} : vector<8x16xbf16>, vector<16x64xbf16>, vector<8x64xf32> -> vector<8x64xf32>
    %c0_13 = arith.constant 0 : index
    %c1_14 = arith.constant 1 : index
    %c0_15 = arith.constant 0 : index
    %c0_16 = arith.constant 0 : index
    %10 = vector.load %arg4[%c0_13, %c1_14, %c0_15, %c0_16] : memref<1x4x8x64xf32, #tpu.memory_space<vmem>>, vector<1x1x8x64xf32>
    %11 = vector.shape_cast %10 : vector<1x1x8x64xf32> to vector<8x64xf32>
    %12 = vector.shape_cast %9 : vector<8x64xf32> to vector<1x1x8x64xf32>
    tpu.vector_store %arg4[%c0_13, %c1_14, %c0_15, %c0_16], %12 {strides = array<i32>} : memref<1x4x8x64xf32, #tpu.memory_space<vmem>>, vector<1x1x8x64xf32>,
    %c0_17 = arith.constant 0 : index
    %c2 = arith.constant 2 : index
    %c0_18 = arith.constant 0 : index
    %c0_19 = arith.constant 0 : index
    %13 = vector.load %arg3[%c0_17, %c2, %c0_18, %c0_19] : memref<1x4x16x64xbf16, #tpu.memory_space<vmem>>, vector<1x1x16x64xbf16>
    %14 = vector.shape_cast %13 : vector<1x1x16x64xbf16> to vector<16x64xbf16>
    %cst_20 = arith.constant dense<0.000000e+00> : vector<8x64xf32>
    %15 = tpu.matmul %0, %14, %cst_20 {dimension_numbers = #tpu.dot_dimension_numbers<[1], [0], [0], [1], [0, 0, 1, 1], [], []>} : vector<8x16xbf16>, vector<16x64xbf16>, vector<8x64xf32> -> vector<8x64xf32>
    %c0_21 = arith.constant 0 : index
    %c2_22 = arith.constant 2 : index
    %c0_23 = arith.constant 0 : index
    %c0_24 = arith.constant 0 : index
    %16 = vector.load %arg4[%c0_21, %c2_22, %c0_23, %c0_24] : memref<1x4x8x64xf32, #tpu.memory_space<vmem>>, vector<1x1x8x64xf32>
    %17 = vector.shape_cast %16 : vector<1x1x8x64xf32> to vector<8x64xf32>
    %18 = vector.shape_cast %15 : vector<8x64xf32> to vector<1x1x8x64xf32>
    tpu.vector_store %arg4[%c0_21, %c2_22, %c0_23, %c0_24], %18 {strides = array<i32>} : memref<1x4x8x64xf32, #tpu.memory_space<vmem>>, vector<1x1x8x64xf32>,
    %c0_25 = arith.constant 0 : index
    %c3 = arith.constant 3 : index
    %c0_26 = arith.constant 0 : index
    %c0_27 = arith.constant 0 : index
    %19 = vector.load %arg3[%c0_25, %c3, %c0_26, %c0_27] : memref<1x4x16x64xbf16, #tpu.memory_space<vmem>>, vector<1x1x16x64xbf16>
    %20 = vector.shape_cast %19 : vector<1x1x16x64xbf16> to vector<16x64xbf16>
    %cst_28 = arith.constant dense<0.000000e+00> : vector<8x64xf32>
    %21 = tpu.matmul %0, %20, %cst_28 {dimension_numbers = #tpu.dot_dimension_numbers<[1], [0], [0], [1], [0, 0, 1, 1], [], []>} : vector<8x16xbf16>, vector<16x64xbf16>, vector<8x64xf32> -> vector<8x64xf32>
    %c0_29 = arith.constant 0 : index
    %c3_30 = arith.constant 3 : index
    %c0_31 = arith.constant 0 : index
    %c0_32 = arith.constant 0 : index
    %22 = vector.load %arg4[%c0_29, %c3_30, %c0_31, %c0_32] : memref<1x4x8x64xf32, #tpu.memory_space<vmem>>, vector<1x1x8x64xf32>
    %23 = vector.shape_cast %22 : vector<1x1x8x64xf32> to vector<8x64xf32>
    %24 = vector.shape_cast %21 : vector<8x64xf32> to vector<1x1x8x64xf32>
    tpu.vector_store %arg4[%c0_29, %c3_30, %c0_31, %c0_32], %24 {strides = array<i32>} : memref<1x4x8x64xf32, #tpu.memory_space<vmem>>, vector<1x1x8x64xf32>,
    return
  }
  func.func @transform_0(%arg0: i32, %arg1: i32) -> (i32, i32) {
    %c0_i32 = arith.constant 0 : i32
    %c0_i32_0 = arith.constant 0 : i32
    %c0_i32_1 = arith.constant 0 : i32
    return %c0_i32, %c0_i32_0 : i32, i32
  }
  func.func @transform_1(%arg0: i32, %arg1: i32) -> (i32, i32, i32, i32) {
    %c0_i32 = arith.constant 0 : i32
    %c0_i32_0 = arith.constant 0 : i32
    %c0_i32_1 = arith.constant 0 : i32
    return %arg0, %arg1, %c0_i32, %c0_i32_0 : i32, i32, i32, i32
  }
  func.func @transform_2(%arg0: i32, %arg1: i32) -> (i32, i32, i32, i32) {
    %c0_i32 = arith.constant 0 : i32
    %c0_i32_0 = arith.constant 0 : i32
    %c0_i32_1 = arith.constant 0 : i32
    return %arg0, %arg1, %c0_i32, %c0_i32_0 : i32, i32, i32, i32
  }
}

</mosaic_0001>

<bundles_post_ra>
// kernel: tile.6
= control target key start
LH: loop header
LB: loop body
LE: loop exit
PB: predicated region body
PF: predicated region fallthrough
CT: control target
= control target key end

     0   :  { %s22_s0 = inlined_call_operand.vmem [shape: f32[64], index: 0, kind: input, shape index: {}]   ;;  %s23_s1 = inlined_call_operand.vmem [shape: f32[4,64], index: 1, kind: output, shape index: {}]  }
   0x1   :  { %v4_v0 = vld [vmem:[%s22_s0] ss:$0 sm:$0xff] }
   0x2   :  { %5 = vst [vmem:[%s23_s1] sm:$0xf] %v4_v0 }

// kernel: tile.7
= control target key start
LH: loop header
LB: loop body
LE: loop exit
PB: predicated region body
PF: predicated region fallthrough
CT: control target
= control target key end

     0   :  { %s7_s8 = smov 3  ;;  %vm9_vm0 = vcmask 523264   ;;  %s34_s9 = smov 64   ;;  %vm16_vm1 = vcmask 1048064   ;;  %s54_s0 = inlined_call_operand.vmem [shape: f32[4,64], index: 0, kind: input, shape index: {}]   ;;  %s55_s1 = inlined_call_operand.vmem [shape: f32[1,256], index: 1, kind: output, shape index: {}]  }
   0x1   :  { %v5_v0 = vld [vmem:[%s54_s0] sm:$0xf]  ;;  %s12_s0 = smov 3 }
   0x2   :  { %6 = vst [vmem:[#allocation1] sm:$0xf] %v5_v0 }
   0x9   :  { %v13_v1 = vld [vmem:[#allocation1 + $0x1] ss:$2 sm:%s12_s0]   ;;  %v8_v2 = vld [vmem:[#allocation1] ss:$2 sm:%s7_s8]  }
   0xa   :  { %14 = vrot.lane.b32.xlu0 %v13_v1, %s34_s9  ;;  %10 = vst.msk [vmem:[#allocation0] ss:$8 sm:$0x3] %vm9_vm0, %v8_v2  }
  0x7c   :  { %v15_v3 = vpop.permute.xlu0 %14  }
  0x7d   :  { %17 = vst.msk [vmem:[#allocation0] ss:$8 sm:$0x3] %vm16_vm1, %v15_v3  }
  0x84   :  { %v22_v4 = vld [vmem:[#allocation0] sm:$0x1]  ;;  %v27_v5 = vld [vmem:[#allocation0 + $0x8] sm:$0x1] }
  0x85   :  { %25 = vst [vmem:[%s55_s1] sm:$0x1] %v22_v4  ;;  %32 = vst [vmem:[%s55_s1 + $0x1] sm:$0x1] %v27_v5 }

// kernel: _lambda_.3
= control target key start
LH: loop header
LB: loop body
LE: loop exit
PB: predicated region body
PF: predicated region fallthrough
CT: control target
= control target key end

     0   :  { %s651_s12 = smov 0   ;;  %s739_s0 = inlined_call_operand.vmem [shape: bf16[128,128], index: 0, kind: input, shape index: {}]   ;;  %s740_s1 = inlined_call_operand.vmem [shape: bf16[128,256], index: 1, kind: input, shape index: {}]   ;;  %s741_s2 = inlined_call_operand.vmem [shape: f32[1,256], index: 2, kind: input, shape index: {}]   ;;  %s742_s3 = inlined_call_operand.vmem [shape: bf16[128,256], index: 3, kind: output, shape index: {}]  }
   0x1 LB: > { %s520_s13 = sadd.s32 4294967295, %s628_s12   ;;  %p524_p0 = scmp.ge.s32.totalorder %s628_s12, 1  ;;  %s628_s12 = sphi %s651_s12, %s13_s12  }
   0x2   : > { %p138_p1 = scmp.lt.s32.totalorder %s628_s12, 3 }
   0x4   : > { %p139_p2 = pnand %p524_p0, %p138_p1 }
   0x5   : > { %s525_s16 = sshll.u32 (!%p139_p2), %s520_s13, 3 }
   0x6   : > { %142 = sbr.rel (%p139_p2) target bundleno = 259 (0x103), region = 32  ;;  %p164_p3 = scmp.lt.s32.totalorder (!%p139_p2), %s525_s16, 15 }
   0xb   : > { %v594_v0 = vld [vmem:[%s740_s1 + $0x74] ss:$8 sps:$4 sm:$0xff]   ;;  %v596_v1 = vld [vmem:[%s740_s1 + $0x70] ss:$8 sps:$4 sm:$0xff]   ;;  %v630_v2 = vmov 0   ;;  %s744_s16 = smov (!%p164_p3, %s525_s16), 15  ;;  %v203_v21 = vlaneseq }
   0xc   : > { %349 = vmatprep.mubr.bf16.mxu0 %v630_v2  ;;  %369 = vmatprep.mubr.bf16.mxu1 %v630_v2  ;;  %v597_v3 = vld [vmem:[%s740_s1 + $0x64] ss:$8 sps:$4 sm:$0xff]   ;;  %v599_v4 = vld [vmem:[%s740_s1 + $0x60] ss:$8 sps:$4 sm:$0xff]   ;;  %v600_v5 = vld [vmem:[%s740_s1 + $0x54] ss:$8 sps:$4 sm:$0xff]  }
   0xd   : > { %317 = vmatprep.subr.bf16.mxu0 %v594_v0  ;;  %569 = vmatprep.subr.bf16.mxu1 %v594_v0  ;;  %s526_s25 = sshll.u32 %s744_s16, 2  ;;  %v602_v6 = vld [vmem:[%s740_s1 + $0x50] ss:$8 sps:$4 sm:$0xff]   ;;  %v603_v7 = vld [vmem:[%s740_s1 + $0x44] ss:$8 sps:$4 sm:$0xff]   ;;  %v204_v22 = vshrl.u32 %v203_v21, 7 }
   0xe   : > { %318 = vmatpush1.bf16.msra.mxu0 %v596_v1  ;;  %577 = vmatpush1.bf16.msra.mxu1 %v596_v1  ;;  %s686_s5 = scalar_lea.vmem %s739_s0, %s526_s25  ;;  %v605_v8 = vld [vmem:[%s740_s1 + $0x40] ss:$8 sps:$4 sm:$0xff]   ;;  %v606_v9 = vld [vmem:[%s740_s1 + $0x34] ss:$8 sps:$4 sm:$0xff]   ;;  %v608_v10 = vld [vmem:[%s740_s1 + $0x30] ss:$8 sps:$4 sm:$0xff]  }
   0xf   : > { %319 = vmatprep.subr.bf16.mxu0 %v597_v3  ;;  %570 = vmatprep.subr.bf16.mxu1 %v597_v3  ;;  %v609_v11 = vld [vmem:[%s740_s1 + $0x24] ss:$8 sps:$4 sm:$0xff]   ;;  %v611_v12 = vld [vmem:[%s740_s1 + $0x20] ss:$8 sps:$4 sm:$0xff]   ;;  %v612_v13 = vld [vmem:[%s740_s1 + $0x14] ss:$8 sps:$4 sm:$0xff]  }
  0x10   : > { %v614_v14 = vld [vmem:[%s740_s1 + $0x10] ss:$8 sps:$4 sm:$0xff]   ;;  %v615_v15 = vld [vmem:[%s740_s1 + $0x4] ss:$8 sps:$4 sm:$0xff]   ;;  %v617_v16 = vld [vmem:[%s740_s1] ss:$8 sps:$4 sm:$0xff]  }
  0x11   : > { %v618_v17 = vld [vmem:[%s686_s5] sm:$0xff]   ;;  %v619_v18 = vld [vmem:[%s686_s5 + $0x10] sm:$0xff]   ;;  %v620_v19 = vld [vmem:[%s686_s5 + $0x8] sm:$0xff]   ;;  %v205_v23 = vsub.s32 0, %v204_v22  ;;  %v209_v25 = vsub.s32 1, %v204_v22  ;;  %s560_s28 = sshll.u32 %s744_s16, 3 }
  0x12   : > { %320 = vmatpush1.bf16.msra.mxu0 %v599_v4  ;;  %578 = vmatpush1.bf16.msra.mxu1 %v599_v4  ;;  %v621_v20 = vld [vmem:[%s686_s5 + $0x18] sm:$0xff]   ;;  %v201_v24 = vld [vmem:[%s741_s2] sm:$0x3]  ;;  %s726_s4 = scalar_lea.vmem %s742_s3, %s560_s28 }
  0x13   : > { %321 = vmatprep.subr.bf16.mxu0 %v600_v5  ;;  %571 = vmatprep.subr.bf16.mxu1 %v600_v5  ;;  %v206_v26 = vrot.slane %v201_v24, %v205_v23  ;;  %v210_v27 = vrot.slane %v201_v24, %v209_v25 }
  0x16   : > { %322 = vmatpush1.bf16.msra.mxu0 %v602_v6  ;;  %579 = vmatpush1.bf16.msra.mxu1 %v602_v6 }
  0x17   : > { %323 = vmatprep.subr.bf16.mxu0 %v603_v7  ;;  %572 = vmatprep.subr.bf16.mxu1 %v603_v7 }
  0x1a   : > { %324 = vmatpush1.bf16.msra.mxu0 %v605_v8  ;;  %580 = vmatpush1.bf16.msra.mxu1 %v605_v8 }
  0x1b   : > { %325 = vmatprep.subr.bf16.mxu0 %v606_v9  ;;  %573 = vmatprep.subr.bf16.mxu1 %v606_v9 }
  0x1e   : > { %326 = vmatpush1.bf16.msra.mxu0 %v608_v10  ;;  %581 = vmatpush1.bf16.msra.mxu1 %v608_v10 }
  0x1f   : > { %327 = vmatprep.subr.bf16.mxu0 %v609_v11  ;;  %574 = vmatprep.subr.bf16.mxu1 %v609_v11 }
  0x22   : > { %328 = vmatpush1.bf16.msra.mxu0 %v611_v12  ;;  %582 = vmatpush1.bf16.msra.mxu1 %v611_v12 }
  0x23   : > { %329 = vmatprep.subr.bf16.mxu0 %v612_v13  ;;  %575 = vmatprep.subr.bf16.mxu1 %v612_v13 }
  0x26   : > { %330 = vmatpush1.bf16.msra.mxu0 %v614_v14  ;;  %583 = vmatpush1.bf16.msra.mxu1 %v614_v14 }
  0x27   : > { %331 = vmatprep.subr.bf16.mxu0 %v615_v15  ;;  %576 = vmatprep.subr.bf16.mxu1 %v615_v15 }
  0x2a   : > { %332 = vmatpush1.bf16.msra.mxu0 %v617_v16  ;;  %584 = vmatpush1.bf16.msra.mxu1 %v617_v16 }
  0x2d   : > { %350 = vmatmul.mubr.bf16.vlgmr.msra.gmra.mxu0 %v618_v17  ;;  %370 = vmatmul.mubr.bf16.vlgmr.msra.gmra.mxu1 %v619_v18 }
  0x2e   : > { %359 = vmatprep.mubr.bf16.mxu0 %v630_v2  ;;  %379 = vmatprep.mubr.bf16.mxu1 %v630_v2 }
  0x35   : > { %360 = vmatmul.mubr.bf16.gmra.mxu0 %v620_v19  ;;  %380 = vmatmul.mubr.bf16.gmra.mxu1 %v621_v20 }
  0xed   : > { %v351_v28 = vpop.f32.mrf.mxu0  ;;  %v371_v29 = vpop.f32.mrf.mxu1 }
  0xee   : > { %v352_v30 = vadd.f32 %v351_v28, %v206_v26  ;;  %v372_v31 = vadd.f32 %v371_v29, %v206_v26 }
  0xef   : > { %v353_v32 = vpop.f32.mrf.mxu0  ;;  %v373_v33 = vpop.f32.mrf.mxu1 }
  0xf0   : > { %v354_v34 = vadd.f32 %v353_v32, %v210_v27  ;;  %v374_v35 = vadd.f32 %v373_v33, %v210_v27  ;;  %v390_v38 = vmax.f32 %v352_v30, 0.0  ;;  %v398_v39 = vmax.f32 %v372_v31, 0.0 }
  0xf1   : > { %v355_v36 = vpop.f32.mrf.mxu0  ;;  %v375_v37 = vpop.f32.mrf.mxu1 }
  0xf2   : > { %v391_v40 = vmax.f32 %v354_v34, 0.0  ;;  %v399_v41 = vmax.f32 %v374_v35, 0.0  ;;  %v356_v42 = vadd.f32 %v355_v36, %v206_v26  ;;  %v376_v43 = vadd.f32 %v375_v37, %v206_v26 }
  0xf3   : > { %v357_v44 = vpop.f32.mrf.mxu0  ;;  %v377_v45 = vpop.f32.mrf.mxu1 }
  0xf4   : > { %v561_v46 = vpack.c.bf16 %v391_v40, %v390_v38  ;;  %v565_v47 = vpack.c.bf16 %v399_v41, %v398_v39  ;;  %v358_v48 = vadd.f32 %v357_v44, %v210_v27  ;;  %v378_v49 = vadd.f32 %v377_v45, %v210_v27 }
  0xf5   : > { %v361_v50 = vpop.f32.mrf.mxu0  ;;  %v381_v51 = vpop.f32.mrf.mxu1  ;;  %v392_v54 = vmax.f32 %v356_v42, 0.0  ;;  %v400_v55 = vmax.f32 %v376_v43, 0.0 }
  0xf6   : > { %454 = vst [vmem:[%s726_s4] sm:$0xff] %v561_v46  ;;  %458 = vst [vmem:[%s726_s4 + $0x20] sm:$0xff] %v565_v47  ;;  %v362_v52 = vadd.f32 %v361_v50, %v206_v26  ;;  %v382_v53 = vadd.f32 %v381_v51, %v206_v26  ;;  %v393_v56 = vmax.f32 %v358_v48, 0.0  ;;  %v401_v57 = vmax.f32 %v378_v49, 0.0 }
  0xf7   : > { %v363_v58 = vpop.f32.mrf.mxu0  ;;  %v383_v59 = vpop.f32.mrf.mxu1 }
  0xf8   : > { %v364_v60 = vadd.f32 %v363_v58, %v210_v27  ;;  %v384_v61 = vadd.f32 %v383_v59, %v210_v27  ;;  %v562_v62 = vpack.c.bf16 %v393_v56, %v392_v54  ;;  %v566_v63 = vpack.c.bf16 %v401_v57, %v400_v55 }
  0xf9   : > { %v365_v0 = vpop.f32.mrf.mxu0  ;;  %v385_v1 = vpop.f32.mrf.mxu1  ;;  %v394_v2 = vmax.f32 %v362_v52, 0.0  ;;  %v402_v3 = vmax.f32 %v382_v53, 0.0 }
  0xfa   : > { %v395_v4 = vmax.f32 %v364_v60, 0.0  ;;  %v403_v5 = vmax.f32 %v384_v61, 0.0  ;;  %455 = vst [vmem:[%s726_s4 + $0x8] sm:$0xff] %v562_v62  ;;  %459 = vst [vmem:[%s726_s4 + $0x28] sm:$0xff] %v566_v63  ;;  %v366_v6 = vadd.f32 %v365_v0, %v206_v26  ;;  %v386_v7 = vadd.f32 %v385_v1, %v206_v26 }
  0xfb   : > { %v367_v8 = vpop.f32.mrf.mxu0  ;;  %v387_v9 = vpop.f32.mrf.mxu1 }
  0xfc   : > { %v563_v10 = vpack.c.bf16 %v395_v4, %v394_v2  ;;  %v567_v11 = vpack.c.bf16 %v403_v5, %v402_v3  ;;  %v368_v12 = vadd.f32 %v367_v8, %v210_v27  ;;  %v388_v13 = vadd.f32 %v387_v9, %v210_v27 }
  0xfd   : > { %v396_v14 = vmax.f32 %v366_v6, 0.0  ;;  %v404_v15 = vmax.f32 %v386_v7, 0.0 }
  0xfe   : > { %456 = vst [vmem:[%s726_s4 + $0x10] sm:$0xff] %v563_v10  ;;  %460 = vst [vmem:[%s726_s4 + $0x30] sm:$0xff] %v567_v11  ;;  %v397_v16 = vmax.f32 %v368_v12, 0.0  ;;  %v405_v17 = vmax.f32 %v388_v13, 0.0 }
 0x100   : > { %v564_v18 = vpack.c.bf16 %v397_v16, %v396_v14  ;;  %v568_v19 = vpack.c.bf16 %v405_v17, %v404_v15 }
 0x102   : > { %457 = vst [vmem:[%s726_s4 + $0x18] sm:$0xff] %v564_v18  ;;  %461 = vst [vmem:[%s726_s4 + $0x38] sm:$0xff] %v568_v19 }
 0x103 PF: > { %s13_s12 = sadd.s32 1, %s628_s12  }
 0x104   : > { %p10_p4 = scmp.ge.s32.totalorder %s13_s12, 4  }
 0x106   :  { %12 = sbr.rel (!%p10_p4) target bundleno = 1 (0x1), region = 62 }

// kernel: _lambda_.4
= control target key start
LH: loop header
LB: loop body
LE: loop exit
PB: predicated region body
PF: predicated region fallthrough
CT: control target
= control target key end

     0   :  { %s581_s9 = smov 0   ;;  %s583_s10 = smov 0   ;;  %s674_s0 = inlined_call_operand.vmem [shape: bf16[8,16], index: 0, kind: input, shape index: {}]   ;;  %s675_s1 = inlined_call_operand.vmem [shape: bf16[2,16,1024], index: 1, kind: input, shape index: {}]   ;;  %s676_s2 = inlined_call_operand.vmem [shape: bf16[2,8,1024], index: 2, kind: output, shape index: {}]  }
   0x1   :  { %s585_s11 = smov 0   ;;  %s587_s12 = smov 0  }
   0x2   :  { %s589_s13 = smov 0   ;;  %s591_s14 = smov 0  }
   0x3   :  { %s593_s15 = smov 0  }
   0x4 LB: > { %s21_s16 = sadd.s32 1, %s555_s13  ;;  %s24_s17 = sadd.s32 1, %s559_s14  ;;  %s563_s15 = sphi %s593_s15, %s12_s15   ;;  %s559_s14 = sphi %s591_s14, %s682_s14   ;;  %s555_s13 = sphi %s589_s13, %s681_s13   ;;  %s551_s12 = sphi %s587_s12, %s680_s12   ;;  %s547_s11 = sphi %s585_s11, %s679_s11   ;;  %s543_s10 = sphi %s583_s10, %s678_s10   ;;  %s539_s9 = sphi %s581_s9, %s677_s9  }
   0x5   : > { %p22_p0 = scmp.ge.s32.totalorder %s21_s16, 2  ;;  %p61_p1 = scmp.ne.s32.totalorder %s543_s10, %s539_s9 }
   0x6   : > { %p62_p2 = scmp.eq.s32.totalorder %s563_s15, 0  ;;  %s54_s21 = sadd.s32 1, %s543_s10 }
   0x7   : > { %s684_s16 = smov (%p22_p0, %s21_s16), 0  ;;  %s686_s17 = smov (!%p22_p0, %s24_s17), %s559_s14 }
   0x8   : > { %p63_p3 = por %p62_p2, %p61_p1  ;;  %p26_p4 = scmp.ge.s32.totalorder %s686_s17, 2 }
   0x9   : > { %s50_s18 = ssub.s32 %s555_s13, %s684_s16  ;;  %p424_p6 = scmp.ge.s32.totalorder %s563_s15, 4 }
   0xa   : > { %s688_s17 = smov (%p26_p4, %s686_s17), 0 }
   0xb   : > { %s49_s19 = ssub.s32 %s559_s14, %s688_s17  ;;  %118 = sbr.rel (%p424_p6) target bundleno = 25 (0x19), region = 20 }
   0xc   : > { %s51_s20 = sor.u32 %s50_s18, %s49_s19 }
   0xd   : > { %p52_p5 = scmp.eq.s32.totalorder %s51_s20, 0 }
   0xf   : > { %s632_s22 = scalar_select %p52_p5, %s543_s10, %s54_s21  }
  0x10   : > { %121 = sbr.rel (!%p63_p3) target bundleno = 25 (0x19), region = 24  ;;  %s123_s23 = sand.u32 (%p63_p3), 1, %s543_s10  }
  0x11   : > { %s426_s24 = sshll.u32 (%p63_p3), %s555_s13, 2  ;;  %s425_s25 = sshll.u32 (%p63_p3), %s123_s23, 5 }
  0x12   : > { %s427_s26 = sshll.u32 (%p63_p3), %s559_s14, 4  ;;  %s125_s4 = scalar_lea.vmem (%p63_p3), [#allocation2], %s425_s25 }
  0x13   : > { %s128_s27 = sadd.s32 (%p63_p3), %s427_s26, %s426_s24 }
  0x14   : > { %s428_s28 = sshll.u32 (%p63_p3), %s128_s27, 2 }
  0x15   : > { %s130_s3 = scalar_lea.vmem %s675_s1, %s428_s28 }
  0x16   : > { %v143_v0 = vld [vmem:[%s130_s3] sm:$0xff]  ;;  %v145_v1 = vld [vmem:[%s130_s3 + $0x8] sm:$0xff] }
  0x17   : > { %v147_v2 = vld [vmem:[%s130_s3 + $0x20] sm:$0xff]  ;;  %144 = vst [vmem:[%s125_s4] sm:$0xff] %v143_v0  ;;  %146 = vst [vmem:[%s125_s4 + $0x8] sm:$0xff] %v145_v1  ;;  %v149_v3 = vld [vmem:[%s130_s3 + $0x28] sm:$0xff] }
  0x18   : > { %148 = vst [vmem:[%s125_s4 + $0x10] sm:$0xff] %v147_v2  ;;  %150 = vst [vmem:[%s125_s4 + $0x18] sm:$0xff] %v149_v3 }
  0x19 PF: > { %p429_p7 = scmp.ge.s32.totalorder %s563_s15, 1  ;;  %p155_p8 = scmp.lt.s32.totalorder %s563_s15, 5 }
  0x1b   : > { %p156_p9 = pnand %p429_p7, %p155_p8 }
  0x1c   : > { %s162_s5 = sand.u32 (!%p156_p9), 1, %s539_s9   ;;  %s431_s9 = sshll.u32 (!%p156_p9), %s547_s11, 2 }
  0x1d   : > { %159 = sbr.rel (%p156_p9) target bundleno = 239 (0xef), region = 47  ;;  %s430_s6 = sshll.u32 (!%p156_p9), %s162_s5, 5 }
  0x1e   : > { %s164_s7 = scalar_lea.vmem (!%p156_p9), [#allocation2], %s430_s6  ;;  %p189_p10 = scmp.lt.s32.totalorder (!%p156_p9), %s551_s12, 1 }
  0x1f   : > { %p191_p11 = scmp.lt.s32.totalorder (!%p156_p9), %s431_s9, 7 }
  0x22   : > { %v565_v4 = vmov 0   ;;  %v503_v5 = vld [vmem:[%s164_s7 + $0x4] ss:$16 sps:$4 sm:$0xff]   ;;  %v505_v6 = vld [vmem:[%s164_s7 + $0xc] ss:$16 sps:$4 sm:$0xff]   ;;  %vm224_vm0 = vcmask 130048  }
  0x23   : > { %260 = vmatprep.mubr.bf16.mxu0 %v565_v4  ;;  %301 = vmatprep.mubr.bf16.mxu1 %v565_v4  ;;  %v507_v7 = vld [vmem:[%s164_s7] ss:$16 sps:$4 sm:$0xff]   ;;  %v508_v8 = vld [vmem:[%s164_s7 + $0x8] ss:$16 sps:$4 sm:$0xff]   ;;  %s690_s12 = smov (!%p189_p10, %s551_s12), 1  ;;  %s692_s9 = smov (!%p191_p11, %s431_s9), 7 }
  0x24   : > { %242 = vmatprep.subr.bf16.mxu0 %v503_v5  ;;  %283 = vmatprep.subr.bf16.mxu1 %v505_v6  ;;  %v199_v9 = vld [vmem:[%s674_s0] sm:$0xf]  ;;  %s432_s19 = sshll.u32 %s690_s12, 3 }
  0x25   : > { %243 = vmatpush1.bf16.msra.mxu0 %v507_v7  ;;  %284 = vmatpush1.bf16.msra.mxu1 %v508_v8  ;;  %s194_s20 = sadd.s32 %s432_s19, %s692_s9 }
  0x26   : > { %s433_s21 = sshll.u32 %s194_s20, 2 }
  0x27   : > { %s196_s25 = scalar_lea.vmem %s676_s2, %s433_s21 }
  0x28   : > { %438 = vmatmul.mubr.msk.bf16.vlgmr.msra.gmra.mxu0 %vm224_vm0, %v199_v9  ;;  %439 = vmatmul.mubr.msk.bf16.vlgmr.msra.gmra.mxu1 %vm224_vm0, %v199_v9 }
  0xe8   : > { %v262_v10 = vpop.f32.mrf.mxu0  ;;  %v303_v11 = vpop.f32.mrf.mxu1 }
  0xea   : > { %v264_v12 = vpop.f32.mrf.mxu0  ;;  %v305_v13 = vpop.f32.mrf.mxu1 }
  0xeb   : > { %v444_v14 = vpack.c.bf16 %v264_v12, %v262_v10  ;;  %v445_v15 = vpack.c.bf16 %v305_v13, %v303_v11 }
  0xec   : > { %v266_v16 = vpop.f32.mrf.mxu0  ;;  %v307_v17 = vpop.f32.mrf.mxu1 }
  0xed   : > { %326 = vst [vmem:[%s196_s25] sm:$0xff] %v444_v14  ;;  %327 = vst [vmem:[%s196_s25 + $0x8] sm:$0xff] %v445_v15 }
  0xee   : > { %v267_v18 = vpop.f32.mrf.mxu0  ;;  %v308_v19 = vpop.f32.mrf.mxu1 }
  0xef PF: > { %s12_s15 = sadd.s32 1, %s563_s15   ;;  %s677_s9 = smov %s543_s10 }
  0xf0   : > { %p9_p12 = scmp.ge.s32.totalorder %s12_s15, 6   ;;  %s678_s10 = smov %s632_s22 }
  0xf1   : > { %s679_s11 = smov %s555_s13  ;;  %s680_s12 = smov %s559_s14 }
  0xf2   : > { %s681_s13 = smov %s684_s16  ;;  %s682_s14 = smov %s688_s17 }
  0xf3   :  { %11 = sbr.rel (!%p9_p12) target bundleno = 4 (0x4), region = 86 }

// kernel: _lambda_.5
= control target key start
LH: loop header
LB: loop body
LE: loop exit
PB: predicated region body
PF: predicated region fallthrough
CT: control target
= control target key end

     0   :  { %7 = vsyncpa [#allocation3], 0  ;;  %s897_s0 = inlined_call_operand.vmem [shape: bf16[8,16], index: 0, kind: input, shape index: {}]   ;;  %s898_s1 = inlined_call_operand.vmem [shape: bf16[2,8,16,64], index: 1, kind: input, shape index: {}]   ;;  %s899_s2 = inlined_call_operand.hbm [shape: f32[2,8,8,64], index: 2, kind: output, shape index: {}]  }
   0x1   :  { %9 = vsyncpa [#allocation3 + $0x1], 0  ;;  %s744_s9 = smov 0   ;;  %s746_s10 = smov 0  }
   0x2   :  { %s748_s11 = smov 0   ;;  %s750_s12 = smov 0  }
   0x3   :  { %s752_s13 = smov 0   ;;  %s754_s14 = smov 0  }
   0x4   :  { %s756_s15 = smov 0   ;;  %s758_s16 = smov 0  }
   0x5 LB: > { %s486_s17 = sadd.s32 4294967295, %s722_s16   ;;  %s487_s18 = sadd.s32 4294967294, %s722_s16   ;;  %s722_s16 = sphi %s758_s16, %s15_s16   ;;  %s718_s15 = sphi %s756_s15, %s908_s15   ;;  %s714_s14 = sphi %s754_s14, %s907_s14   ;;  %s710_s13 = sphi %s752_s13, %s906_s13   ;;  %s706_s12 = sphi %s750_s12, %s905_s12   ;;  %s702_s11 = sphi %s748_s11, %s904_s11   ;;  %s698_s10 = sphi %s746_s10, %s903_s10   ;;  %s694_s9 = sphi %s744_s9, %s902_s9  }
   0x6   : > { %s24_s19 = sadd.s32 1, %s714_s14  ;;  %s27_s20 = sadd.s32 1, %s718_s15 }
   0x7   : > { %p25_p0 = scmp.ge.s32.totalorder %s24_s19, 2  ;;  %p95_p1 = scmp.ne.s32.totalorder %s702_s11, %s698_s10 }
   0x8   : > { %p96_p2 = scmp.eq.s32.totalorder %s486_s17, 3  ;;  %p101_p5 = scmp.ne.s32.totalorder %s698_s10, %s694_s9 }
   0x9   : > { %s910_s19 = smov (%p25_p0, %s24_s19), 0  ;;  %s912_s20 = smov (!%p25_p0, %s27_s20), %s718_s15 }
   0xa   : > { %s81_s21 = ssub.s32 %s714_s14, %s910_s19  ;;  %p795_p3 = por %p96_p2, %p95_p1 }
   0xb   : > { %p29_p4 = scmp.ge.s32.totalorder %s912_s20, 2  ;;  %p102_p6 = scmp.eq.s32.totalorder %s487_s18, 3 }
   0xc   : > { %p490_p7 = scmp.ge.s32.totalorder %s722_s16, 1  ;;  %p137_p9 = scmp.lt.s32.totalorder %s722_s16, 5 }
   0xd   : > { %s914_s20 = smov (%p29_p4, %s912_s20), 0  ;;  %p804_p8 = por %p102_p6, %p101_p5 }
   0xe   : > { %s80_s24 = ssub.s32 %s718_s15, %s914_s20  ;;  %s85_s25 = sadd.s32 1, %s702_s11 }
   0xf   : > { %s82_s26 = sor.u32 %s81_s21, %s80_s24  ;;  %p138_p10 = pnand %p490_p7, %p137_p9 }
  0x10   : > { %p83_p11 = scmp.eq.s32.totalorder %s82_s26, 0  ;;  %s816_s28 = sshll.u32 (!%p138_p10), %s706_s12, 2 }
  0x11   : > { %141 = sbr.rel (%p138_p10) target bundleno = 250 (0xfa), region = 28  ;;  %p165_p12 = scmp.lt.s32.totalorder (!%p138_p10), %s710_s13, 1 }
  0x12   : > { %s813_s27 = scalar_select %p83_p11, %s702_s11, %s85_s25  }
  0x13   : > { %p167_p13 = scmp.lt.s32.totalorder (!%p138_p10), %s816_s28, 7  ;;  %s161_s21 = sand.u32 (!%p138_p10), 1, %s698_s10  }
  0x14   : > { %s491_s24 = sshll.u32 (!%p138_p10), %s161_s21, 5  ;;  %s515_s25 = sshll.u32 (!%p138_p10), %s710_s13, 3 }
  0x15   : > { %s163_s26 = scalar_lea.vmem (!%p138_p10), [#allocation2], %s491_s24  ;;  %s726_s7 = smov (!%p138_p10), [#allocation2]  }
  0x16   : > { %v724_v0 = vmov 0.0   ;;  %s166_s29 = scalar_select %p165_p12, %s710_s13, 1  ;;  %vm725_vm0 = vmmov 0   ;;  %v177_v2 = vld [vmem:[%s897_s0] sm:$0xf]  ;;  %vm186_vm1 = vcmask 130048  }
  0x17   : > { %527 = vmatprep.subr.bf16.mxu0 %v724_v0  ;;  %533 = vmatprep.subr.bf16.mxu1 %v724_v0  ;;  %s168_s30 = scalar_select %p167_p13, %s816_s28, 7  ;;  %vm230_vm2 = vcmask 523264  }
  0x18   : > { %529 = vmatprep.mubr.msk.bf16.mxu0 %vm725_vm0, %v724_v0  ;;  %535 = vmatprep.mubr.msk.bf16.mxu1 %vm725_vm0, %v724_v0  ;;  %s494_s3 = sshll.u32 %s166_s29, 4  ;;  %s398_s29 = sadd.s32 %s515_s25, %s816_s28 }
  0x19   : > { %s493_s4 = sshll.u32 %s168_s30, 1  ;;  %s401_s30 = sshll.u32 %s163_s26, 4  ;;  %s837_s30 = int_to_ptr.vmem [resolvable:$true] %s401_s30 }
  0x1a   : > { %s171_s5 = sadd.s32 %s494_s3, %s493_s4  ;;  %s516_s3 = sshll.u32 %s398_s29, 7 }
  0x1b   : > { %s495_s6 = sshll.u32 %s171_s5, 2  ;;  %s842_s5 = scalar_lea.hbm %s899_s2, %s516_s3 }
  0x1c   : > { %s173_s12 = scalar_lea.vmem %s898_s1, %s495_s6  ;;  %s846_s28 = scalar_lea.sflag [#allocation3], %s161_s21 }
  0x1d   : > { %v626_v1 = vld [vmem:[%s173_s12] sm:$0xff]   ;;  %v627_v3 = vld [vmem:[%s173_s12 + $0x8] sm:$0xff]   ;;  %v628_v4 = vld [vmem:[%s173_s12 + $0x10] sm:$0xff]   ;;  %s630_s6 = scalar_lea.vmem %s837_s30, 512  ;;  %s634_s8 = sshll.u32 %s726_s7, 4  ;;  %s635_s8 = int_to_ptr.vmem [resolvable:$false] %s634_s8 }
  0x1e   : > { %528 = vmatpush3.bf16.msra.mxu0 %v626_v1  ;;  %534 = vmatpush3.bf16.msra.mxu1 %v627_v3  ;;  %v629_v5 = vld [vmem:[%s173_s12 + $0x18] sm:$0xff]   ;;  %p631_p0 = scmp.ne.s32.totalorder %s837_s30, %s630_s6  ;;  %s636_s12 = scalar_lea.vmem %s635_s8, 1024 }
  0x1f   : > { %539 = vmatprep.subr.bf16.mxu0 %v724_v0  ;;  %545 = vmatprep.subr.bf16.mxu1 %v724_v0  ;;  %p637_p4 = scmp.lt.s32.totalorder %s837_s30, %s635_s8  ;;  %p638_p5 = scmp.lt.s32.totalorder %s636_s12, %s630_s6 }
  0x20   : > { %p632_p1 = pnand %p631_p0, %p795_p3 }
  0x21   : > { %530 = vmatmul.mubr.msk.bf16.vlgmr.msra.gmra.mxu0 %vm186_vm1, %v177_v2  ;;  %536 = vmatmul.mubr.msk.bf16.vlgmr.msra.gmra.mxu1 %vm186_vm1, %v177_v2  ;;  %p639_p6 = por %p638_p5, %p637_p4 }
  0x22   : > { %540 = vmatpush3.bf16.msra.mxu0 %v628_v4  ;;  %546 = vmatpush3.bf16.msra.mxu1 %v629_v5  ;;  %p633_p2 = pneg %p632_p1 }
  0x23   : > { %541 = vmatprep.mubr.msk.bf16.mxu0 %vm725_vm0, %v724_v0  ;;  %547 = vmatprep.mubr.msk.bf16.mxu1 %vm725_vm0, %v724_v0 }
  0x24   : > { %p640_p7 = pnand %p639_p6, %p633_p2 }
  0x29   : > { %542 = vmatmul.mubr.msk.bf16.vlgmr.msra.gmra.mxu0 %vm186_vm1, %v177_v2  ;;  %548 = vmatmul.mubr.msk.bf16.vlgmr.msra.gmra.mxu1 %vm186_vm1, %v177_v2 }
  0xe1   : > { %v224_v6 = vpop.f32.mrf.mxu0  ;;  %v275_v7 = vpop.f32.mrf.mxu1 }
  0xe2   : > { %231 = vst.msk [vmem:[%s163_s26] sm:$0xff] %vm230_vm2, %v224_v6  ;;  %502 = vst.msk [vmem:[%s163_s26 + $0x8] sm:$0xff] %vm230_vm2, %v275_v7 }
  0xe3   : > { %v531_v8 = vpop.f32.mrf.mxu0  ;;  %v537_v9 = vpop.f32.mrf.mxu1 }
  0xe5   : > { %v227_v10 = vpop.f32.mrf.mxu0  ;;  %v278_v11 = vpop.f32.mrf.mxu1 }
  0xe7   : > { %v532_v12 = vpop.f32.mrf.mxu0  ;;  %v538_v13 = vpop.f32.mrf.mxu1 }
  0xe9   : > { %v326_v14 = vpop.f32.mrf.mxu0  ;;  %v377_v15 = vpop.f32.mrf.mxu1 }
  0xea   : > { %507 = vst.msk [vmem:[%s163_s26 + $0x10] sm:$0xff] %vm230_vm2, %v326_v14  ;;  %512 = vst.msk [vmem:[%s163_s26 + $0x18] sm:$0xff] %vm230_vm2, %v377_v15 }
  0xeb   : > { %v543_v16 = vpop.f32.mrf.mxu0  ;;  %v549_v17 = vpop.f32.mrf.mxu1 }
  0xec   : > { %643 = shalt.err (!%p640_p7)
}
  0xed   : > { %s644_s17 = scalar_lea.hbm %s842_s5, 512  ;;  %s648_s24 = scalar_lea.hbm %s899_s2, 2048 }
  0xee   : > { %p645_p9 = scmp.ne.s32.totalorder %s842_s5, %s644_s17  ;;  %p649_p12 = scmp.lt.s32.totalorder %s842_s5, %s899_s2 }
  0xef   : > { %p650_p13 = scmp.lt.s32.totalorder %s648_s24, %s644_s17 }
  0xf0   : > { %p646_p10 = pnand %p645_p9, %p795_p3 }
  0xf1   : > { %p651_p0 = por %p650_p13, %p649_p12 }
  0xf2   : > { %p647_p11 = pneg %p646_p10 }
  0xf4   : > { %p652_p1 = pnand %p651_p0, %p647_p11 }
  0xf6   : > { %655 = shalt.err (!%p652_p1)
}
  0xf7   : > { %s727_s29 = smov 128   ;;  %s728_s3 = smov 8   ;;  %v329_v18 = vpop.f32.mrf.mxu0  ;;  %v380_v19 = vpop.f32.mrf.mxu1 }
  0xf8   : > { %551 = dma.vmem_to_hbm [thread:$0]  (%p795_p3), %s837_s30, 512, %s842_s5, %s846_s28, %s727_s29, %s727_s29, %s728_s3  }
  0xf9   : > { %v544_v20 = vpop.f32.mrf.mxu0  ;;  %v550_v21 = vpop.f32.mrf.mxu1 }
  0xfa PF: > { %p557_p2 = scmp.ge.s32.totalorder %s722_s16, 2  ;;  %s416_s13 = sand.u32 1, %s694_s9  }
  0xfb   : > { %s417_s4 = scalar_lea.sflag [#allocation3], %s416_s13 }
  0xfc   : > { %p554_p4 = pnand %p557_p2, %p804_p8 }
  0xfe   : > { %p555_p5 = pneg %p554_p4 }
 0x100   : > { %689 = dma.done.wait (%p555_p5), %s417_s4, 512  }
 0x101   : > { %691 = vsyncadd (%p555_p5), %s417_s4, 4294966784  ;;  %s15_s16 = sadd.s32 1, %s722_s16   ;;  %s902_s9 = smov %s698_s10 }
 0x102   : > { %p12_p6 = scmp.ge.s32.totalorder %s15_s16, 6   ;;  %s903_s10 = smov %s702_s11 }
 0x103   : > { %s904_s11 = smov %s813_s27  ;;  %s905_s12 = smov %s714_s14 }
 0x104   : > { %s906_s13 = smov %s718_s15  ;;  %s907_s14 = smov %s910_s19 }
 0x105   : > { %s908_s15 = smov %s914_s20  ;;  %14 = sbr.rel (!%p12_p6) target bundleno = 5 (0x5), region = 69 }
 0x10a   :  { %422 = vsyncpa [#allocation3], 1 }
 0x10b   :  { %424 = vsyncpa [#allocation3 + $0x1], 1 }

</bundles_post_ra>
